<compile_context>
chip_gen: v6e
topology: v6e:2x2x1
jax: 0.10.0
libtpu: 0.0.40
codegen_flags: <defaults>
</compile_context>

<pallas_src>
import functools

import jax
import jax.numpy as jnp
from jax.experimental import pallas as pl
from jax.experimental.pallas import tpu as pltpu


# ---------------------------------------------------------------------------
# VMEM-budget-driven row tile selection.
# ---------------------------------------------------------------------------
_LOGIT_VMEM_BUDGET = 32 * 1024 * 1024   # double-buffered logit blocks
_VMEM_LIMIT_BYTES = 48 * 1024 * 1024    # raised scoped limit; fits v7x's 64 MiB
_MAX_ROW_TILE = 2048


def _round_down(x, m):
    return (x // m) * m


def _pick_row_tile(n_rows, vocab, itemsize):
    """Largest row tile whose double-buffered logit blocks fit the VMEM budget."""
    t = _LOGIT_VMEM_BUDGET // (2 * vocab * itemsize)   # 2 = double buffering
    t = min(int(t), _MAX_ROW_TILE)
    if n_rows >= 16:
        t = min(t, n_rows)                             # don't exceed the array
    t = max(16, _round_down(t, 16))                    # 16 covers f32(8)/bf16(16)
    return t


# ---------------------------------------------------------------------------
# Kernel.
# ---------------------------------------------------------------------------
def _label_smoothing_kernel(target_ref, logit_ref, out_ref, *,
                            n_rows, vocab_size, ignore_index, smoothing):
    i = pl.program_id(0)

    logit = logit_ref[...].astype(jnp.float32)          # (TN, V)
    tgt = target_ref[...]                                # (TN, 1) int32
    tn, v = logit.shape

    confidence = jnp.float32(1.0 - smoothing)
    base = jnp.float32(smoothing / (vocab_size - 1))
    coeff = confidence - base

    # Row validity: inside the real array AND not the ignore index.
    row_idx = i * tn + jax.lax.broadcasted_iota(jnp.int32, (tn, 1), 0)
    valid = jnp.logical_and(row_idx < n_rows, tgt != ignore_index)   # (TN, 1)

    # Algebraic identity:
    #   sum_v(label * logit) = base * sum_v(logit) + (conf - base) * logit[target]
    row_sum = jnp.sum(logit, axis=-1, keepdims=True)                 # (TN, 1)
    iota_v = jax.lax.broadcasted_iota(jnp.int32, (tn, v), 1)
    gathered = jnp.sum(jnp.where(iota_v == tgt, logit, 0.0),
                       axis=-1, keepdims=True)                       # (TN, 1)

    per_row = base * row_sum + coeff * gathered                      # (TN, 1)
    per_row = jnp.where(valid, per_row, 0.0)   # select (not mul): NaN/Inf safe

    partial = -jnp.sum(per_row)                                      # scalar
    # Each grid step owns its private (1, 8, 128) output block -> fully
    # parallel across steps / TensorCores; wrapper reduces the partials.
    out_ref[...] = jnp.broadcast_to(partial, out_ref.shape).astype(jnp.float32)


# ---------------------------------------------------------------------------
# Wrapper.
# ---------------------------------------------------------------------------
def label_smoothing_loss(logit, target, *, vocab_size, ignore_index,
                         smoothing=0.1, row_tile=None,
                         vmem_limit_bytes=_VMEM_LIMIT_BYTES):
    """Pallas equivalent of LabelSmoothingLoss.forward.

    logit : (..., V) float array (f32 or bf16)
    target: (...)    int array (same leading dims as logit)
    """
    v = logit.shape[-1]
    assert v == vocab_size, "last dim of logit must equal vocab_size"

    logit2d = logit.reshape(-1, v)
    target2d = target.reshape(-1, 1).astype(jnp.int32)
    n = logit2d.shape[0]

    if row_tile is None:
        row_tile = _pick_row_tile(n, v, jnp.dtype(logit2d.dtype).itemsize)

    num_blocks = pl.cdiv(n, row_tile)

    kernel = functools.partial(
        _label_smoothing_kernel,
        n_rows=n,
        vocab_size=vocab_size,
        ignore_index=ignore_index,
        smoothing=smoothing,
    )

    partials = pl.pallas_call(
        kernel,
        out_shape=jax.ShapeDtypeStruct((num_blocks, 8, 128), jnp.float32),
        grid_spec=pltpu.PrefetchScalarGridSpec(
            num_scalar_prefetch=0,
            grid=(num_blocks,),
            in_specs=[
                pl.BlockSpec((row_tile, 1), lambda i: (i, 0)),   # target
                pl.BlockSpec((row_tile, v), lambda i: (i, 0)),   # logit
            ],
            out_specs=pl.BlockSpec((1, 8, 128), lambda i: (i, 0, 0)),
        ),
        compiler_params=pltpu.CompilerParams(
            dimension_semantics=("parallel",),
            vmem_limit_bytes=vmem_limit_bytes),
    )(target2d, logit2d)

    # torch.mean divides by the total number of rows (incl. ignored ones).
    return jnp.sum(partials[:, 0, 0]) / jnp.float32(n)


# ---------------------------------------------------------------------------
# Pure-JAX reference matching the PyTorch semantics exactly.
# ---------------------------------------------------------------------------
def _reference_loss(logit, target, *, vocab_size, ignore_index, smoothing=0.1):
    v = logit.shape[-1]
    logit2d = logit.reshape(-1, v).astype(jnp.float32)
    tgt = target.reshape(-1)
    conf = 1.0 - smoothing
    base = smoothing / (vocab_size - 1)
    onehot = jax.nn.one_hot(tgt, v, dtype=jnp.float32)
    label = onehot * conf + (1.0 - onehot) * base
    label = jnp.where((tgt != ignore_index)[:, None], label, 0.0)
    return jnp.mean(jnp.sum(-label * logit2d, axis=-1))


if __name__ == "__main__":
    vocab_size = 128
    ignore_index = 0
    smoothing = 0.1
    # n = 24 rows with row_tile = 16 -> 2 grid steps, ragged last block
    # (exercises the in-kernel row-validity masking, no wrapper-side padding).
    batch, seq = 2, 12

    key = jax.random.PRNGKey(0)
    k_logit, k_tgt = jax.random.split(key)
    logit = jax.random.normal(k_logit, (batch, seq, vocab_size), jnp.float32)
    target = jax.random.randint(k_tgt, (batch, seq), 0, vocab_size, jnp.int32)
    # force a couple of ignored positions
    target = target.at[0, 0].set(ignore_index).at[1, 3].set(ignore_index)

    loss = label_smoothing_loss(
        logit, target,
        vocab_size=vocab_size, ignore_index=ignore_index, smoothing=smoothing)
    loss = jax.block_until_ready(loss)

    ref = _reference_loss(
        logit, target,
        vocab_size=vocab_size, ignore_index=ignore_index, smoothing=smoothing)

    assert jnp.allclose(loss, ref, atol=1e-5, rtol=1e-5), (loss, ref)
    print("KERNEL_OK")
</pallas_src>

<mosaic_0001>
module attributes {stable_mosaic.version = 11 : i64} {
  func.func @_label_smoothing_kernel(%arg0: i32, %arg1: memref<16x1xi32, #tpu.memory_space<vmem>>, %arg2: memref<16x128xf32, #tpu.memory_space<vmem>>, %arg3: memref<1x8x128xf32, #tpu.memory_space<vmem>>) attributes {dimension_semantics = [#tpu.dimension_semantics<parallel>], iteration_bounds = array<i64: 2>, scalar_prefetch = 0 : i64, scratch_operands = 0 : i64, tpu.core_type = #tpu.core_type<tc>, window_params = [{transform_indices = @transform_0, window_bounds = array<i64: 16, 1>}, {transform_indices = @transform_1, window_bounds = array<i64: 16, 128>}, {transform_indices = @transform_2, window_bounds = array<i64: 1, 8, 128>}]} {
    %c0 = arith.constant 0 : index
    %c0_0 = arith.constant 0 : index
    %0 = vector.load %arg2[%c0, %c0_0] : memref<16x128xf32, #tpu.memory_space<vmem>>, vector<16x128xf32>
    %c0_1 = arith.constant 0 : index
    %c0_2 = arith.constant 0 : index
    %1 = vector.load %arg1[%c0_1, %c0_2] : memref<16x1xi32, #tpu.memory_space<vmem>>, vector<16x1xi32>
    %cst = arith.constant 0.899999976 : f32
    %cst_3 = arith.constant 7.87401571E-4 : f32
    %2 = arith.subf %cst, %cst_3 : f32
    %c16_i32 = arith.constant 16 : i32
    %3 = arith.muli %arg0, %c16_i32 : i32
    %4 = tpu.iota {dimensions = array<i32: 0>} : vector<16x1xi32>
    %5 = vector.broadcast %3 : i32 to vector<16x1xi32>
    %6 = arith.addi %5, %4 : vector<16x1xi32>
    %c24_i32 = arith.constant 24 : i32
    %7 = vector.broadcast %c24_i32 : i32 to vector<16x1xi32>
    %8 = arith.cmpi slt, %6, %7 : vector<16x1xi32>
    %c0_i32 = arith.constant 0 : i32
    %9 = vector.broadcast %c0_i32 : i32 to vector<16x1xi32>
    %10 = arith.cmpi ne, %1, %9 : vector<16x1xi32>
    %11 = arith.andi %8, %10 : vector<16x1xi1>
    %cst_4 = arith.constant dense<0.000000e+00> : vector<16xf32>
    %12 = vector.multi_reduction <add>, %0, %cst_4 [1] : vector<16x128xf32> to vector<16xf32>
    %13 = vector.shape_cast %12 : vector<16xf32> to vector<16x1xf32>
    %14 = tpu.iota {dimensions = array<i32: 1>} : vector<16x128xi32>
    %15 = vector.broadcast %1 : vector<16x1xi32> to vector<16x128xi32>
    %16 = arith.cmpi eq, %14, %15 : vector<16x128xi32>
    %cst_5 = arith.constant 0.000000e+00 : f32
    %17 = vector.broadcast %cst_5 : f32 to vector<16x128xf32>
    %18 = arith.select %16, %0, %17 : vector<16x128xi1>, vector<16x128xf32>
    %cst_6 = arith.constant dense<0.000000e+00> : vector<16xf32>
    %19 = vector.multi_reduction <add>, %18, %cst_6 [1] : vector<16x128xf32> to vector<16xf32>
    %20 = vector.shape_cast %19 : vector<16xf32> to vector<16x1xf32>
    %cst_7 = arith.constant 7.87401571E-4 : f32
    %21 = vector.broadcast %cst_7 : f32 to vector<16x1xf32>
    %22 = arith.mulf %21, %13 : vector<16x1xf32>
    %23 = vector.broadcast %2 : f32 to vector<16x1xf32>
    %24 = arith.mulf %23, %20 : vector<16x1xf32>
    %25 = arith.addf %22, %24 : vector<16x1xf32>
    %cst_8 = arith.constant 0.000000e+00 : f32
    %26 = vector.broadcast %cst_8 : f32 to vector<16x1xf32>
    %27 = arith.select %11, %25, %26 : vector<16x1xi1>, vector<16x1xf32>
    %28 = vector.shape_cast %27 : vector<16x1xf32> to vector<1x16x1xf32>
    %cst_9 = arith.constant dense<0.000000e+00> : vector<1xf32>
    %29 = vector.multi_reduction <add>, %28, %cst_9 [1, 2] : vector<1x16x1xf32> to vector<1xf32>
    %30 = vector.shape_cast %29 : vector<1xf32> to vector<1x1x1xf32>
    %31 = vector.extract %30[0, 0, 0] : f32 from vector<1x1x1xf32>
    %cst_10 = arith.constant 0.000000e+00 : f32
    %32 = arith.subf %cst_10, %31 : f32
    %33 = vector.broadcast %32 : f32 to vector<1x8x128xf32>
    %c0_11 = arith.constant 0 : index
    %c0_12 = arith.constant 0 : index
    %c0_13 = arith.constant 0 : index
    %34 = vector.load %arg3[%c0_11, %c0_12, %c0_13] : memref<1x8x128xf32, #tpu.memory_space<vmem>>, vector<1x8x128xf32>
    tpu.vector_store %arg3[%c0_11, %c0_12, %c0_13], %33 {strides = array<i32>} : memref<1x8x128xf32, #tpu.memory_space<vmem>>, vector<1x8x128xf32>,
    return
  }
  func.func @transform_0(%arg0: i32) -> (i32, i32) {
    %c0_i32 = arith.constant 0 : i32
    %c0_i32_0 = arith.constant 0 : i32
    return %arg0, %c0_i32 : i32, i32
  }
  func.func @transform_1(%arg0: i32) -> (i32, i32) {
    %c0_i32 = arith.constant 0 : i32
    %c0_i32_0 = arith.constant 0 : i32
    return %arg0, %c0_i32 : i32, i32
  }
  func.func @transform_2(%arg0: i32) -> (i32, i32, i32) {
    %c0_i32 = arith.constant 0 : i32
    %c0_i32_0 = arith.constant 0 : i32
    %c0_i32_1 = arith.constant 0 : i32
    return %arg0, %c0_i32, %c0_i32_0 : i32, i32, i32
  }
}

</mosaic_0001>

<bundles_post_ra>
// kernel: tpu_custom_call.1
= control target key start
LH: loop header
LB: loop body
LE: loop exit
PB: predicated region body
PF: predicated region fallthrough
CT: control target
= control target key end

     0   :  { %7 = vsyncpa [#allocation3], 0  ;;  %s596_s0 = inlined_call_operand.vmem [shape: s32[24,1], index: 0, kind: input, shape index: {}]   ;;  %s597_s1 = inlined_call_operand.vmem [shape: f32[24,128], index: 1, kind: input, shape index: {}]   ;;  %s598_s2 = inlined_call_operand.hbm [shape: f32[2,8,128], index: 2, kind: output, shape index: {}]  }
   0x1   :  { %9 = vsyncpa [#allocation3 + $0x1], 0  ;;  %s488_s9 = smov 0   ;;  %s490_s10 = smov 0  }
   0x2   :  { %s492_s11 = smov 0   ;;  %s494_s12 = smov 0  }
   0x3 LB: > { %s509_s13 = sadd.s32 4294967295, %s469_s12   ;;  %s352_s14 = sadd.s32 4294967294, %s469_s12   ;;  %s469_s12 = sphi %s494_s12, %s608_s12   ;;  %s465_s11 = sphi %s492_s11, %s607_s11   ;;  %s461_s10 = sphi %s490_s10, %s606_s10   ;;  %s457_s9 = sphi %s488_s9, %s605_s9  }
   0x4   : > { %s513_s15 = sadd.s32 1, %s469_s12   ;;  %s74_s16 = sadd.s32 1, %s465_s11 }
   0x5   : > { %s71_s17 = ssub.s32 %s469_s12, %s513_s15  ;;  %p84_p0 = scmp.ne.s32.totalorder %s465_s11, %s461_s10 }
   0x6   : > { %p72_p1 = scmp.eq.s32.totalorder %s71_s17, 0  ;;  %p85_p2 = scmp.eq.s32.totalorder %s509_s13, 1 }
   0x7   : > { %p90_p3 = scmp.ne.s32.totalorder %s461_s10, %s457_s9  ;;  %p91_p4 = scmp.eq.s32.totalorder %s352_s14, 1 }
   0x8   : > { %s524_s18 = scalar_select %p72_p1, %s465_s11, %s74_s16  }
   0x9   : > { %p526_p5 = por %p85_p2, %p84_p0  ;;  %p530_p6 = por %p91_p4, %p90_p3 }
   0xa   : > { %p355_p7 = scmp.ge.s32.totalorder %s469_s12, 1  ;;  %p143_p8 = scmp.lt.s32.totalorder %s469_s12, 3 }
   0xc   : > { %p144_p9 = pnand %p355_p7, %p143_p8 }
   0xd   : > { %s357_s21 = sshll.u32 (!%p144_p9), %s509_s13, 1  ;;  %s361_s22 = sshll.u32 (!%p144_p9), %s509_s13, 4 }
   0xe   : > { %147 = sbr.rel (%p144_p9) target bundleno = 515 (0x203), region = 28  ;;  %p183_p10 = scmp.lt.s32.totalorder (!%p144_p9), %s357_s21, 2 }
   0xf   : > { %s175_s30 = sand.u32 (!%p144_p9), 1, %s461_s10   ;;  %s363_s6 = sshll.u32 (!%p144_p9), %s509_s13, 7 }
  0x10   : > { %s356_s3 = sshll.u32 (!%p144_p9), %s175_s30, 3  ;;  %s561_s17 = scalar_lea.hbm (!%p144_p9), %s598_s2, %s363_s6 }
  0x11   : > { %s177_s4 = scalar_lea.vmem (!%p144_p9), [#allocation2], %s356_s3 }
  0x12   : > { %s281_s5 = sshll.u32 (!%p144_p9), %s177_s4, 4  ;;  %s282_s5 = int_to_ptr.vmem [resolvable:$true] %s281_s5 }
  0x13   : > { %v211_v0 = vlaneseq  ;;  %v471_v1 = vmov 0   ;;  %v214_v2 = vstv %s361_s22  ;;  %s610_s21 = smov (!%p183_p10, %s357_s21), 2  ;;  %vm251_vm8 = vcmask 7168   ;;  %s409_s22 = scalar_lea.vmem %s282_s5, 128 }
  0x14   : > { %408 = vset.pattern.permute.xlu0 %v471_v1  ;;  %s358_s23 = sshll.u32 %s610_s21, 3  ;;  %s268_s21 = scalar_lea.sflag [#allocation3], %s175_s30 }
  0x15   : > { %v212_v3 = vshrl.u32 %v211_v0, 7  ;;  %s186_s26 = scalar_lea.vmem %s596_s0, %s358_s23  ;;  %s200_s29 = scalar_lea.vmem %s597_s1, %s358_s23  ;;  %v228_v13 = vand.u32 127, %v211_v0 }
  0x16   : > { %v208_v7 = vld [vmem:[%s186_s26] sm:$0xff]  ;;  %v209_v8 = vld [vmem:[%s186_s26 + $0x8] sm:$0xff]  ;;  %p410_p11 = scmp.ne.s32.totalorder %s282_s5, %s409_s22  ;;  %s472_s23 = smov [#allocation2]  }
  0x17   : > { %v215_v4 = vadd.s32 %v214_v2, %v212_v3  ;;  %v213_v5 = vadd.s32 8, %v212_v3  ;;  %v206_v9 = vld [vmem:[%s200_s29] sm:$0xff]  ;;  %230 = vperm.xlu0 %408, %v208_v7   ;;  %vm219_vm1 = vcmp.ne.s32.totalorder %v208_v7, 0  ;;  %vm220_vm3 = vcmp.ne.s32.totalorder %v209_v8, 0  ;;  %v207_v11 = vld [vmem:[%s200_s29 + $0x8] sm:$0xff]  ;;  %s413_s24 = sshll.u32 %s472_s23, 4  ;;  %s414_s24 = int_to_ptr.vmem [resolvable:$false] %s413_s24 }
  0x18   : > { %223 = vadd.xlane.f32.xlu1 %v206_v9  ;;  %p411_p12 = pnand %p410_p11, %p526_p5  ;;  %s415_s13 = scalar_lea.vmem %s414_s24, 256 }
  0x19   : > { %vm217_vm0 = vcmp.lt.s32.totalorder %v215_v4, 24  ;;  %v216_v6 = vadd.s32 %v214_v2, %v213_v5  ;;  %p416_p0 = scmp.lt.s32.totalorder %s282_s5, %s414_s24  ;;  %p417_p1 = scmp.lt.s32.totalorder %s415_s13, %s409_s22 }
  0x1a   : > { %vm544_vm4 = vmand %vm217_vm0, %vm219_vm1  ;;  %p412_p13 = pneg %p411_p12 }
  0x1b   : > { %vm218_vm2 = vcmp.lt.s32.totalorder %v216_v6, 24  ;;  %233 = vperm.xlu0 %408, %v209_v8   ;;  %p418_p2 = por %p417_p1, %p416_p0 }
  0x1c   : > { %vm548_vm5 = vmand %vm218_vm2, %vm220_vm3  ;;  %225 = vadd.xlane.f32.xlu1 %v207_v11 }
  0x1d   : > { %p419_p3 = pnand %p418_p2, %p412_p13 }
  0x92   : > { %v231_v14 = vpop.permute.xlu0 %230 }
  0x93   : > { %vm235_vm6 = vcmp.eq.s32.totalorder %v228_v13, %v231_v14 }
  0x94   : > { %v237_v15 = vsel %vm235_vm6, %v206_v9, 0.0 }
  0x95   : > { %239 = vadd.xlane.f32.xlu0 %v237_v15 }
  0x96   : > { %v234_v16 = vpop.permute.xlu0 %233 }
  0x97   : > { %vm236_vm7 = vcmp.eq.s32.totalorder %v228_v13, %v234_v16 }
  0x98   : > { %v238_v17 = vsel %vm236_vm7, %v207_v11, 0.0 }
  0x99   : > { %241 = vadd.xlane.f32.xlu1 %v238_v17 }
  0xa1   : > { %v224_v18 = vpop.xlane.xlu1 %223 }
  0xa2   : > { %v243_v21 = vmul.f32 0.0007874016, %v224_v18 }
  0xa5   : > { %v226_v19 = vpop.xlane.xlu1 %225 }
  0xa6   : > { %v244_v25 = vmul.f32 0.0007874016, %v226_v19 }
 0x11e   : > { %v240_v20 = vpop.xlane.xlu0 %239 }
 0x11f   : > { %v245_v22 = vmul.f32 0.8992126, %v240_v20 }
 0x121   : > { %v247_v23 = vadd.f32 %v245_v22, %v243_v21 }
 0x122   : > { %v242_v24 = vpop.xlane.xlu1 %241 }
 0x123   : > { %v246_v26 = vmul.f32 0.8992126, %v242_v24  ;;  %v249_v28 = vsel %vm544_vm4, %v247_v23, 0.0 }
 0x124   : > { %v252_v30 = vsel %vm251_vm8, %v249_v28, 0.0 }
 0x125   : > { %v248_v27 = vadd.f32 %v246_v26, %v244_v25 }
 0x127   : > { %v250_v29 = vsel %vm548_vm5, %v248_v27, 0.0 }
 0x128   : > { %v253_v31 = vsel %vm251_vm8, %v250_v29, 0.0 }
 0x129   : > { %v254_v32 = vadd.f32 %v253_v31, %v252_v30 }
 0x12b   : > { %255 = vadd.xlane.f32.xlu1 %v254_v32 }
 0x1b4   : > { %v256_v33 = vpop.xlane.xlu1 %255 }
 0x1b5   : > { %v257_v34 = vrot.slane %v256_v33, 4 }
 0x1b7   : > { %v258_v35 = vadd.f32 %v257_v34, %v256_v33 }
 0x1b9   : > { %v259_v36 = vrot.slane %v258_v35, 2 }
 0x1bb   : > { %v260_v37 = vadd.f32 %v259_v36, %v258_v35 }
 0x1bd   : > { %v261_v38 = vrot.slane %v260_v37, 1 }
 0x1bf   : > { %v262_v39 = vadd.f32 %v261_v38, %v260_v37 }
 0x1c1   : > { %366 = vpush %v262_v39 }
 0x1f2   : > { %s367_s7 = spop %366 }
 0x1f3   : > { %s264_s8 = ssub.f32 0.0, %s367_s7 }
 0x1f5   : > { %v265_v40 = vstv %s264_s8 }
 0x1f6   : > { %266 = vst [vmem:[%s177_s4] sm:$0xff] %v265_v40 }
 0x1f7   : > { %422 = shalt.err (!%p419_p3)
}
 0x1f8   : > { %s423_s25 = scalar_lea.hbm %s561_s17, 128  ;;  %s427_s28 = scalar_lea.hbm %s598_s2, 256 }
 0x1f9   : > { %p424_p4 = scmp.ne.s32.totalorder %s561_s17, %s423_s25  ;;  %p428_p9 = scmp.lt.s32.totalorder %s561_s17, %s598_s2 }
 0x1fa   : > { %p429_p10 = scmp.lt.s32.totalorder %s427_s28, %s423_s25 }
 0x1fb   : > { %p425_p7 = pnand %p424_p4, %p526_p5 }
 0x1fc   : > { %p430_p11 = por %p429_p10, %p428_p9 }
 0x1fd   : > { %p426_p8 = pneg %p425_p7 }
 0x1ff   : > { %p431_p12 = pnand %p430_p11, %p426_p8 }
 0x201   : > { %434 = shalt.err (!%p431_p12)
}
 0x202   : > { %368 = dma.vmem_to_hbm [thread:$0]  (%p526_p5), %s282_s5, 128, %s561_s17, %s268_s21  }
 0x203 PF: > { %p374_p13 = scmp.ge.s32.totalorder %s469_s12, 2  ;;  %s293_s3 = sand.u32 1, %s457_s9  }
 0x204   : > { %s294_s4 = scalar_lea.sflag [#allocation3], %s293_s3 }
 0x205   : > { %p371_p0 = pnand %p374_p13, %p530_p6 }
 0x207   : > { %p372_p1 = pneg %p371_p0 }
 0x209   : > { %452 = dma.done.wait (%p372_p1), %s294_s4, 128  }
 0x20a   : > { %454 = vsyncadd (%p372_p1), %s294_s4, 4294967168  ;;  %p12_p2 = scmp.ge.s32.totalorder %s513_s15, 4   ;;  %s605_s9 = smov %s461_s10 }
 0x20b   : > { %s606_s10 = smov %s465_s11  ;;  %s607_s11 = smov %s524_s18 }
 0x20c   : > { %s608_s12 = smov %s513_s15  ;;  %14 = sbr.rel (!%p12_p2) target bundleno = 3 (0x3), region = 66 }
 0x211   :  { %299 = vsyncpa [#allocation3], 1 }
 0x212   :  { %301 = vsyncpa [#allocation3 + $0x1], 1 }

</bundles_post_ra>
